<compile_context>
chip_gen: v5e
topology: v5e:2x2
jax: 0.10.0
libtpu: 0.0.40
codegen_flags: <defaults>
</compile_context>

<pallas_src>
import jax
import jax.numpy as jnp
from jax.experimental import pallas as pl
from jax.experimental.pallas import tpu as pltpu


def _round_up(x, m):
    return ((x + m - 1) // m) * m


# --------------------------------------------------------------------------
# Fused kernel: backbone-stub pointwise conv (Cin -> 48) + per-voxel logits
#   feats  = conv_wT @ x_blk                  (48, TV)     -- stays in VMEM
#   logits = weight_sel @ feats + bias_sel    (N_sel, TV)  -- lane-dense store
# This avoids the (B, 48, V) HBM roundtrip between backbone output and the
# logits matmul of the original module's head.
# TODO(synk): the real SwinUNETR / UNet3D backbone is an external module not
# provided in the source; this pointwise projection only reproduces the shape
# contract (B, 48, D, H, W) of `out`.
# --------------------------------------------------------------------------
def _fused_conv_logits_kernel(x_ref, wT_ref, wsel_ref, bsel_ref, o_ref):
    x = x_ref[0]                                              # (Cin, TV)
    feats = jnp.dot(wT_ref[...], x,
                    preferred_element_type=jnp.float32)       # (48, TV), VMEM only
    w = wsel_ref[0]                                           # (N_sel, 48)
    logits = jnp.dot(w, feats,
                     preferred_element_type=jnp.float32) + bsel_ref[0]
    o_ref[0] = logits.astype(o_ref.dtype)


def fused_conv_logits(x_bcv, conv_wT, weight_sel, bias_sel, *, tile_v=4096):
    B, Cin, V = x_bcv.shape
    FEAT = conv_wT.shape[0]
    N_sel = weight_sel.shape[1]

    # Lane-aligned tile; pad the voxel axis so the grid covers V exactly
    # (padded voxels see zero input and are sliced off afterwards).
    tile_v = min(tile_v, _round_up(V, 128))
    Vp = _round_up(V, tile_v)
    if Vp != V:
        x_bcv = jnp.pad(x_bcv, ((0, 0), (0, 0), (0, Vp - V)))

    out = pl.pallas_call(
        _fused_conv_logits_kernel,
        out_shape=jax.ShapeDtypeStruct((B, N_sel, Vp), jnp.float32),
        grid_spec=pltpu.PrefetchScalarGridSpec(
            num_scalar_prefetch=0,
            grid=(B, Vp // tile_v),
            in_specs=[
                pl.BlockSpec((1, Cin, tile_v), lambda b, v: (b, 0, v)),
                pl.BlockSpec((FEAT, Cin), lambda b, v: (0, 0)),
                pl.BlockSpec((1, N_sel, FEAT), lambda b, v: (b, 0, 0)),
                pl.BlockSpec((1, N_sel, 1), lambda b, v: (b, 0, 0)),
            ],
            out_specs=pl.BlockSpec((1, N_sel, tile_v), lambda b, v: (b, 0, v)),
        ),
        compiler_params=pltpu.CompilerParams(
            dimension_semantics=("parallel", "parallel")),
    )(x_bcv, conv_wT, weight_sel, bias_sel)

    return out[:, :, :V]


# --------------------------------------------------------------------------
# controller Linear(dim, 48) + LayerNorm(48) on the seg queries.
# Tensor is (B, N, dim) with N ~ a few classes: far below the (8,128) tile,
# so plain JAX is faster than a dedicated pallas_call.
# --------------------------------------------------------------------------
def controller_layernorm(seg_query, w, b, gamma, beta):
    h = seg_query @ w + b
    mu = jnp.mean(h, axis=-1, keepdims=True)
    var = jnp.mean((h - mu) ** 2, axis=-1, keepdims=True)
    y = (h - mu) * jax.lax.rsqrt(var + 1e-5)                  # PyTorch LayerNorm eps
    return y * gamma + beta


# --------------------------------------------------------------------------
# CAT forward (head path)
# --------------------------------------------------------------------------
def cat_forward(params, x_in, ap_emb, tp_emb, organ_list):
    B, Cin, D, H, W = x_in.shape
    V = D * H * W

    # keep channels-first; NCDHW -> (B, Cin, V) is a free reshape
    x_bcv = x_in.reshape(B, Cin, V)

    # seg_query = self.seg_query.weight, broadcast over batch
    seg_query = jnp.broadcast_to(
        params["seg_query"][None], (B,) + params["seg_query"].shape)

    # TODO(synk): ShareRefiner_Layer attend stack and PromptRefer are external
    # modules whose definitions are not provided; seg_query / ap_emb / tp_emb
    # pass through unrefined here.
    del ap_emb, tp_emb

    # weight = self.out_norm_layer(self.controller(seg_query))   (B, N, 48)
    weight = controller_layernorm(
        seg_query, params["ctrl_w"], params["ctrl_b"],
        params["ln_g"], params["ln_b"])

    # Organ index_select applied to the tiny weight tensor *before* the voxel
    # kernel: only selected class channels are computed / written to HBM.
    organ_index = jnp.array([i - 1 for i in organ_list if i != 0], dtype=jnp.int32)
    weight_sel = jnp.take(weight, organ_index, axis=1)        # (B, N_sel, 48)

    # transposed conv weight for channels-first math; fold the conv bias into a
    # tiny per-class bias (weight_sel @ conv_b) so the kernel adds (N_sel, TV)
    # instead of (48, TV) per tile.
    conv_wT = params["conv_w"].T                              # (48, Cin)
    bias_sel = weight_sel @ params["conv_b"].reshape(-1, 1)   # (B, N_sel, 1)

    # fused backbone-stub conv + logits, voxel dim on the lane axis
    logits = fused_conv_logits(x_bcv, conv_wT, weight_sel, bias_sel)  # (B,N_sel,V)
    return logits.reshape(B, weight_sel.shape[1], D, H, W)


# --------------------------------------------------------------------------
# Pure-JAX reference of the same head path, for correctness checking
# --------------------------------------------------------------------------
def cat_forward_ref(params, x_in, ap_emb, tp_emb, organ_list):
    B, Cin, D, H, W = x_in.shape
    V = D * H * W
    x_flat = jnp.transpose(x_in, (0, 2, 3, 4, 1)).reshape(B, V, Cin)
    out_feats = x_flat @ params["conv_w"] + params["conv_b"]
    seg_query = jnp.broadcast_to(
        params["seg_query"][None], (B,) + params["seg_query"].shape)
    h = seg_query @ params["ctrl_w"] + params["ctrl_b"]
    mu = jnp.mean(h, axis=-1, keepdims=True)
    var = jnp.mean((h - mu) ** 2, axis=-1, keepdims=True)
    weight = (h - mu) / jnp.sqrt(var + 1e-5) * params["ln_g"] + params["ln_b"]
    logits = jnp.einsum("bvc,bnc->bvn", out_feats, weight)
    N = weight.shape[1]
    logits_out = jnp.transpose(logits, (0, 2, 1)).reshape(B, N, D, H, W)
    organ_index = jnp.array([i - 1 for i in organ_list if i != 0], dtype=jnp.int32)
    return jnp.take(logits_out, organ_index, axis=1)


if __name__ == "__main__":
    # small shapes consistent with the module (only_last branch, scaled down)
    B, Cin, D, H, W = 2, 2, 8, 8, 8     # img_size=8, in_channels=2
    N_CLS = 4                            # out_channels
    DIM = 96                             # stand-in for dims[-1]
    FEAT = 48                            # SwinUNETR feature_size / controller out

    key = jax.random.PRNGKey(0)
    ks = jax.random.split(key, 10)

    params = {
        "conv_w": 0.1 * jax.random.normal(ks[0], (Cin, FEAT), jnp.float32),
        "conv_b": 0.1 * jax.random.normal(ks[1], (1, FEAT), jnp.float32),
        "seg_query": jax.random.normal(ks[2], (N_CLS, DIM), jnp.float32),
        "ctrl_w": 0.05 * jax.random.normal(ks[3], (DIM, FEAT), jnp.float32),
        "ctrl_b": 0.05 * jax.random.normal(ks[4], (1, FEAT), jnp.float32),
        "ln_g": jnp.ones((1, FEAT), jnp.float32),
        "ln_b": jnp.zeros((1, FEAT), jnp.float32),
    }

    x_in = jax.random.normal(ks[5], (B, Cin, D, H, W), jnp.float32)
    ap_emb = jax.random.normal(ks[6], (N_CLS, DIM), jnp.float32)   # unused (TODO above)
    tp_emb = jax.random.normal(ks[7], (N_CLS, DIM), jnp.float32)   # unused (TODO above)
    organ_list = [1, 3, 0, 2]            # -> select class channels [0, 2, 1]

    out = cat_forward(params, x_in, ap_emb, tp_emb, organ_list)
    out = jax.block_until_ready(out)

    ref = cat_forward_ref(params, x_in, ap_emb, tp_emb, organ_list)
    assert out.shape == (B, 3, D, H, W), out.shape
    assert jnp.allclose(out, ref, atol=1e-4, rtol=1e-4), float(jnp.max(jnp.abs(out - ref)))

    print("KERNEL_OK")
</pallas_src>

<mosaic_0001>
module attributes {stable_mosaic.version = 11 : i64} {
  func.func @_fused_conv_logits_kernel(%arg0: i32, %arg1: i32, %arg2: memref<1x2x512xf32, #tpu.memory_space<vmem>>, %arg3: memref<48x2xf32, #tpu.memory_space<vmem>>, %arg4: memref<1x3x48xf32, #tpu.memory_space<vmem>>, %arg5: memref<1x3x1xf32, #tpu.memory_space<vmem>>, %arg6: memref<1x3x512xf32, #tpu.memory_space<vmem>>) attributes {dimension_semantics = [#tpu.dimension_semantics<parallel>, #tpu.dimension_semantics<parallel>], iteration_bounds = array<i64: 2, 1>, scalar_prefetch = 0 : i64, scratch_operands = 0 : i64, tpu.core_type = #tpu.core_type<tc>, window_params = [{transform_indices = @transform_0, window_bounds = array<i64: 1, 2, 512>}, {pipeline_mode = #tpu.pipeline_mode<synchronous>, transform_indices = @transform_1, window_bounds = array<i64: 48, 2>}, {transform_indices = @transform_2, window_bounds = array<i64: 1, 3, 48>}, {transform_indices = @transform_3, window_bounds = array<i64: 1, 3, 1>}, {transform_indices = @transform_4, window_bounds = array<i64: 1, 3, 512>}]} {
    %c0 = arith.constant 0 : index
    %c0_0 = arith.constant 0 : index
    %c0_1 = arith.constant 0 : index
    %0 = vector.load %arg2[%c0, %c0_0, %c0_1] : memref<1x2x512xf32, #tpu.memory_space<vmem>>, vector<1x2x512xf32>
    %1 = vector.shape_cast %0 : vector<1x2x512xf32> to vector<2x512xf32>
    %c0_2 = arith.constant 0 : index
    %c0_3 = arith.constant 0 : index
    %2 = vector.load %arg3[%c0_2, %c0_3] : memref<48x2xf32, #tpu.memory_space<vmem>>, vector<48x2xf32>
    %cst = arith.constant dense<0.000000e+00> : vector<48x512xf32>
    %3 = tpu.matmul %2, %1, %cst {dimension_numbers = #tpu.dot_dimension_numbers<[1], [0], [0], [1], [0, 0, 1, 1], [], []>} : vector<48x2xf32>, vector<2x512xf32>, vector<48x512xf32> -> vector<48x512xf32>
    %c0_4 = arith.constant 0 : index
    %c0_5 = arith.constant 0 : index
    %c0_6 = arith.constant 0 : index
    %4 = vector.load %arg4[%c0_4, %c0_5, %c0_6] : memref<1x3x48xf32, #tpu.memory_space<vmem>>, vector<1x3x48xf32>
    %5 = vector.shape_cast %4 : vector<1x3x48xf32> to vector<3x48xf32>
    %cst_7 = arith.constant dense<0.000000e+00> : vector<3x512xf32>
    %6 = tpu.matmul %5, %3, %cst_7 {dimension_numbers = #tpu.dot_dimension_numbers<[1], [0], [0], [1], [0, 0, 1, 1], [], []>} : vector<3x48xf32>, vector<48x512xf32>, vector<3x512xf32> -> vector<3x512xf32>
    %c0_8 = arith.constant 0 : index
    %c0_9 = arith.constant 0 : index
    %c0_10 = arith.constant 0 : index
    %7 = vector.load %arg5[%c0_8, %c0_9, %c0_10] : memref<1x3x1xf32, #tpu.memory_space<vmem>>, vector<1x3x1xf32>
    %8 = vector.shape_cast %7 : vector<1x3x1xf32> to vector<3x1xf32>
    %9 = vector.broadcast %8 : vector<3x1xf32> to vector<3x512xf32>
    %10 = arith.addf %6, %9 : vector<3x512xf32>
    %c0_11 = arith.constant 0 : index
    %c0_12 = arith.constant 0 : index
    %c0_13 = arith.constant 0 : index
    %11 = vector.load %arg6[%c0_11, %c0_12, %c0_13] : memref<1x3x512xf32, #tpu.memory_space<vmem>>, vector<1x3x512xf32>
    %12 = vector.shape_cast %11 : vector<1x3x512xf32> to vector<3x512xf32>
    %13 = vector.shape_cast %10 : vector<3x512xf32> to vector<1x3x512xf32>
    tpu.vector_store %arg6[%c0_11, %c0_12, %c0_13], %13 {strides = array<i32>} : memref<1x3x512xf32, #tpu.memory_space<vmem>>, vector<1x3x512xf32>,
    return
  }
  func.func @transform_0(%arg0: i32, %arg1: i32) -> (i32, i32, i32) {
    %c0_i32 = arith.constant 0 : i32
    %c0_i32_0 = arith.constant 0 : i32
    return %arg0, %c0_i32, %arg1 : i32, i32, i32
  }
  func.func @transform_1(%arg0: i32, %arg1: i32) -> (i32, i32) {
    %c0_i32 = arith.constant 0 : i32
    %c0_i32_0 = arith.constant 0 : i32
    %c0_i32_1 = arith.constant 0 : i32
    return %c0_i32, %c0_i32_0 : i32, i32
  }
  func.func @transform_2(%arg0: i32, %arg1: i32) -> (i32, i32, i32) {
    %c0_i32 = arith.constant 0 : i32
    %c0_i32_0 = arith.constant 0 : i32
    %c0_i32_1 = arith.constant 0 : i32
    return %arg0, %c0_i32, %c0_i32_0 : i32, i32, i32
  }
  func.func @transform_3(%arg0: i32, %arg1: i32) -> (i32, i32, i32) {
    %c0_i32 = arith.constant 0 : i32
    %c0_i32_0 = arith.constant 0 : i32
    %c0_i32_1 = arith.constant 0 : i32
    return %arg0, %c0_i32, %c0_i32_0 : i32, i32, i32
  }
  func.func @transform_4(%arg0: i32, %arg1: i32) -> (i32, i32, i32) {
    %c0_i32 = arith.constant 0 : i32
    %c0_i32_0 = arith.constant 0 : i32
    return %arg0, %c0_i32, %arg1 : i32, i32, i32
  }
}

</mosaic_0001>

<bundles_post_ra>
// kernel: tpu_custom_call.1
= control target key start
LH: loop header
LB: loop body
LE: loop exit
PB: predicated region body
PF: predicated region fallthrough
CT: control target
= control target key end

     0   :  { %s790_s15 = smov 0   ;;  %s792_s16 = smov 0   ;;  %s880_s0 = inlined_call_operand.vmem [shape: f32[2,2,512], index: 0, kind: input, shape index: {}]   ;;  %s881_s1 = inlined_call_operand.vmem [shape: f32[48,2], index: 1, kind: input, shape index: {}]   ;;  %s882_s2 = inlined_call_operand.vmem [shape: f32[2,3,48], index: 2, kind: input, shape index: {}]   ;;  %s883_s3 = inlined_call_operand.vmem [shape: f32[2,3,1], index: 3, kind: input, shape index: {}]   ;;  %s884_s4 = inlined_call_operand.vmem [shape: f32[2,3,512], index: 4, kind: output, shape index: {}]  }
   0x1   :  { %s794_s17 = smov 0  }
   0x2 LB: > { %s26_s18 = sadd.s32 1, %s758_s16  ;;  %p671_p0 = scmp.ge.s32.totalorder %s762_s17, 1  ;;  %s762_s17 = sphi %s794_s17, %s14_s17   ;;  %s758_s16 = sphi %s792_s16, %s886_s16   ;;  %s754_s15 = sphi %s790_s15, %s885_s15  }
   0x3   : > { %p28_p1 = scmp.ge.s32.totalorder %s26_s18, 2  ;;  %p201_p2 = scmp.lt.s32.totalorder %s762_s17, 3 }
   0x5   : > { %s888_s18 = smov (%p28_p1, %s26_s18), 0  ;;  %p202_p3 = pnand %p671_p0, %p201_p2 }
   0x6   : > { %p244_p4 = scmp.lt.s32.totalorder (!%p202_p3), %s754_s15, 1 }
   0x7   : > { %205 = sbr.rel (%p202_p3) target bundleno = 348 (0x15c), region = 36 }
   0xc   : > { %s890_s15 = smov (!%p244_p4, %s754_s15), 1  ;;  %vm303_vm0 = vcmask 1041408   ;;  %v272_v1 = vld [vmem:[%s881_s1] sm:$0xff]  ;;  %vm284_vm1 = vcmask 15360   ;;  %v273_v6 = vld [vmem:[%s881_s1 + $0x8] sm:$0xff]  ;;  %v274_v7 = vld [vmem:[%s881_s1 + $0x10] sm:$0xff] }
   0xd   : > { %s712_s19 = sshll.u32 %s890_s15, 3  ;;  %v275_v8 = vld [vmem:[%s881_s1 + $0x18] sm:$0xff]  ;;  %v276_v9 = vld [vmem:[%s881_s1 + $0x20] sm:$0xff]  ;;  %v277_v10 = vld [vmem:[%s881_s1 + $0x28] sm:$0xff]  ;;  %s674_s9 = sshll.u32 %s890_s15, 2  ;;  %v764_v26 = vmov 0  }
   0xe   : > { %s251_s22 = scalar_lea.vmem %s880_s0, %s712_s19  ;;  %s260_s12 = scalar_lea.vmem %s883_s3, %s674_s9  ;;  %739 = vset.pattern.permute.xlu0 %v764_v26  ;;  %vm459_vm2 = vcmask 392192   ;;  %vm549_vm3 = vcmask 1043456  }
   0xf   : > { %v271_v0 = vld [vmem:[%s251_s22] sm:$0xff]  ;;  %s256_s19 = scalar_lea.vmem %s882_s2, %s674_s9  ;;  %s713_s20 = sshll.u32 %s890_s15, 4 }
  0x10   : > { %279 = vst [vmem:[#allocation1] ss:$4 sm:$0xff] %v271_v0  ;;  %v453_v25 = vld [vmem:[%s260_s12] sm:$0x7]  ;;  %s269_s23 = scalar_lea.vmem %s884_s4, %s713_s20 }
  0x11   : > { %456 = vperm.xlu0 %739, %v453_v25   ;;  %v452_v37 = vld [vmem:[%s256_s19] sm:$0x7] }
  0x17   : > { %v280_v2 = vld.sshfl [vmem:[#allocation1] sm:$0xff pattern:$0x73625140]  ;;  %v281_v3 = vld.sshfl [vmem:[#allocation1 + $0x8] sm:$0xff pattern:$0x73625140] }
  0x18   : > { %678 = vmatpush.msk.msra.mxu0 %vm303_vm0, %v280_v2  ;;  %685 = vmatpush.msk.msra.mxu1 %vm303_vm0, %v281_v3  ;;  %v282_v4 = vld.sshfl [vmem:[#allocation1 + $0x10] sm:$0xff pattern:$0x73625140]  ;;  %v283_v5 = vld.sshfl [vmem:[#allocation1 + $0x18] sm:$0xff pattern:$0x73625140] }
  0x19   : > { %692 = vmatpush.msk.msra.mxu2 %vm303_vm0, %v282_v4  ;;  %699 = vmatpush.msk.msra.mxu3 %vm303_vm0, %v283_v5 }
  0x1a   : > { %679 = vmatmul.msk.f32.vlgmr.msra.gmra.mxu0 %vm284_vm1, %v272_v1  ;;  %686 = vmatmul.msk.f32.vlgmr.msra.gmra.mxu1 %vm284_vm1, %v272_v1 }
  0x1b   : > { %693 = vmatmul.msk.f32.vlgmr.msra.gmra.mxu2 %vm284_vm1, %v272_v1  ;;  %700 = vmatmul.msk.f32.vlgmr.msra.gmra.mxu3 %vm284_vm1, %v272_v1 }
  0x22   : > { %680 = vmatmul.msk.f32.gmra.mxu0 %vm284_vm1, %v273_v6  ;;  %687 = vmatmul.msk.f32.gmra.mxu1 %vm284_vm1, %v273_v6 }
  0x23   : > { %694 = vmatmul.msk.f32.gmra.mxu2 %vm284_vm1, %v273_v6  ;;  %701 = vmatmul.msk.f32.gmra.mxu3 %vm284_vm1, %v273_v6 }
  0x2a   : > { %681 = vmatmul.msk.f32.gmra.mxu0 %vm284_vm1, %v274_v7  ;;  %688 = vmatmul.msk.f32.gmra.mxu1 %vm284_vm1, %v274_v7 }
  0x2b   : > { %695 = vmatmul.msk.f32.gmra.mxu2 %vm284_vm1, %v274_v7  ;;  %702 = vmatmul.msk.f32.gmra.mxu3 %vm284_vm1, %v274_v7 }
  0x32   : > { %682 = vmatmul.msk.f32.gmra.mxu0 %vm284_vm1, %v275_v8  ;;  %689 = vmatmul.msk.f32.gmra.mxu1 %vm284_vm1, %v275_v8 }
  0x33   : > { %696 = vmatmul.msk.f32.gmra.mxu2 %vm284_vm1, %v275_v8  ;;  %703 = vmatmul.msk.f32.gmra.mxu3 %vm284_vm1, %v275_v8 }
  0x3a   : > { %683 = vmatmul.msk.f32.gmra.mxu0 %vm284_vm1, %v276_v9  ;;  %690 = vmatmul.msk.f32.gmra.mxu1 %vm284_vm1, %v276_v9 }
  0x3b   : > { %697 = vmatmul.msk.f32.gmra.mxu2 %vm284_vm1, %v276_v9  ;;  %704 = vmatmul.msk.f32.gmra.mxu3 %vm284_vm1, %v276_v9 }
  0x42   : > { %684 = vmatmul.msk.f32.gmra.mxu0 %vm284_vm1, %v277_v10  ;;  %691 = vmatmul.msk.f32.gmra.mxu1 %vm284_vm1, %v277_v10 }
  0x43   : > { %698 = vmatmul.msk.f32.gmra.mxu2 %vm284_vm1, %v277_v10  ;;  %705 = vmatmul.msk.f32.gmra.mxu3 %vm284_vm1, %v277_v10 }
  0x83   : > { %v457_v38 = vpop.permute.xlu0 %456 }
  0x97   : > { %v329_v11 = vpop.f32.mrf.mxu0  ;;  %v364_v12 = vpop.f32.mrf.mxu1 }
  0x9e   : > { %v399_v13 = vpop.f32.mrf.mxu2  ;;  %v434_v14 = vpop.f32.mrf.mxu3 }
  0x9f   : > { %v332_v15 = vpop.f32.mrf.mxu0  ;;  %v367_v16 = vpop.f32.mrf.mxu1 }
  0xa6   : > { %v402_v17 = vpop.f32.mrf.mxu2  ;;  %v437_v18 = vpop.f32.mrf.mxu3 }
  0xa7   : > { %v335_v19 = vpop.f32.mrf.mxu0  ;;  %v370_v20 = vpop.f32.mrf.mxu1 }
  0xae   : > { %v405_v21 = vpop.f32.mrf.mxu2  ;;  %v440_v22 = vpop.f32.mrf.mxu3 }
  0xaf   : > { %v338_v23 = vpop.f32.mrf.mxu0  ;;  %v373_v24 = vpop.f32.mrf.mxu1 }
  0xb6   : > { %v408_v27 = vpop.f32.mrf.mxu2  ;;  %v443_v28 = vpop.f32.mrf.mxu3 }
  0xb7   : > { %v341_v29 = vpop.f32.mrf.mxu0  ;;  %v376_v30 = vpop.f32.mrf.mxu1 }
  0xbe   : > { %v411_v31 = vpop.f32.mrf.mxu2  ;;  %v446_v32 = vpop.f32.mrf.mxu3 }
  0xbf   : > { %v344_v33 = vpop.f32.mrf.mxu0  ;;  %v379_v34 = vpop.f32.mrf.mxu1 }
  0xc0   : > { %473 = vmatpush.msrb.mxu0 %v344_v33  ;;  %493 = vmatpush.msrb.mxu1 %v379_v34 }
  0xc2   : > { %474 = vmatpush.msrb.mxu0 %v341_v29  ;;  %494 = vmatpush.msrb.mxu1 %v376_v30 }
  0xc4   : > { %475 = vmatpush.msrb.mxu0 %v338_v23  ;;  %495 = vmatpush.msrb.mxu1 %v373_v24 }
  0xc6   : > { %v414_v35 = vpop.f32.mrf.mxu2  ;;  %v449_v36 = vpop.f32.mrf.mxu3  ;;  %476 = vmatpush.msrb.mxu0 %v335_v19  ;;  %496 = vmatpush.msrb.mxu1 %v370_v20 }
  0xc7   : > { %513 = vmatpush.msrb.mxu2 %v414_v35  ;;  %533 = vmatpush.msrb.mxu3 %v449_v36 }
  0xc8   : > { %477 = vmatpush.msrb.mxu0 %v332_v15  ;;  %497 = vmatpush.msrb.mxu1 %v367_v16 }
  0xc9   : > { %514 = vmatpush.msrb.mxu2 %v411_v31  ;;  %534 = vmatpush.msrb.mxu3 %v446_v32 }
  0xca   : > { %478 = vmatpush.msrb.mxu0 %v329_v11  ;;  %498 = vmatpush.msrb.mxu1 %v364_v12 }
  0xcb   : > { %515 = vmatpush.msrb.mxu2 %v408_v27  ;;  %535 = vmatpush.msrb.mxu3 %v443_v28 }
  0xcc   : > { %707 = vmatmul.msk.f32.vlgmr.msrb.gmra.mxu1 %vm459_vm2, %v452_v37  ;;  %706 = vmatmul.msk.f32.vlgmr.msrb.gmra.mxu0 %vm459_vm2, %v452_v37 }
  0xcd   : > { %516 = vmatpush.msrb.mxu2 %v405_v21  ;;  %536 = vmatpush.msrb.mxu3 %v440_v22 }
  0xcf   : > { %517 = vmatpush.msrb.mxu2 %v402_v17  ;;  %537 = vmatpush.msrb.mxu3 %v437_v18 }
  0xd1   : > { %518 = vmatpush.msrb.mxu2 %v399_v13  ;;  %538 = vmatpush.msrb.mxu3 %v434_v14 }
  0xd2   : > { %709 = vmatmul.msk.f32.vlgmr.msrb.gmra.mxu3 %vm459_vm2, %v452_v37  ;;  %708 = vmatmul.msk.f32.vlgmr.msrb.gmra.mxu2 %vm459_vm2, %v452_v37 }
 0x149   : > { %v500_v39 = vpop.f32.mrf.mxu1  ;;  %v480_v40 = vpop.f32.mrf.mxu0 }
 0x14a   : > { %v501_v41 = vadd.f32 %v500_v39, %v457_v38  ;;  %v481_v42 = vadd.f32 %v480_v40, %v457_v38 }
 0x14c   : > { %v547_v43 = vrot.slane %v501_v41, 4 }
 0x14e   : > { %v550_v44 = vsel %vm549_vm3, %v481_v42, %v547_v43 }
 0x14f   : > { %554 = vst [vmem:[%s269_s23] sm:$0x77] %v550_v44 }
 0x155   : > { %v540_v45 = vpop.f32.mrf.mxu3  ;;  %v520_v46 = vpop.f32.mrf.mxu2 }
 0x156   : > { %v541_v47 = vadd.f32 %v540_v45, %v457_v38  ;;  %v521_v49 = vadd.f32 %v520_v46, %v457_v38 }
 0x158   : > { %v548_v48 = vrot.slane %v541_v47, 4 }
 0x15a   : > { %v551_v50 = vsel %vm549_vm3, %v521_v49, %v548_v48 }
 0x15b   : > { %555 = vst [vmem:[%s269_s23 + $0x8] sm:$0x77] %v551_v50 }
 0x15c PF: > { %s14_s17 = sadd.s32 1, %s762_s17   ;;  %s885_s15 = smov %s758_s16 }
 0x15d   : > { %p11_p5 = scmp.ge.s32.totalorder %s14_s17, 4   ;;  %s886_s16 = smov %s888_s18 }
 0x15f   :  { %13 = sbr.rel (!%p11_p5) target bundleno = 2 (0x2), region = 72 }

</bundles_post_ra>
